<compile_context>
chip_gen: v7x
topology: tpu7x:2x2x1
jax: 0.10.0
libtpu: 0.0.40
codegen_flags: <defaults>
</compile_context>

<pallas_src>
import numpy as np
import jax
import jax.numpy as jnp
from jax import lax
from jax.experimental import pallas as pl
from jax.experimental.pallas import tpu as pltpu


def _build_tap_masks(H, W, dilate):
    """(9, H*W) f32 {0,1} masks: tap (kh,kw) is valid where the read stays in-image."""
    ii, jj = np.meshgrid(np.arange(H), np.arange(W), indexing="ij")
    masks = []
    for kh in range(3):
        for kw in range(3):
            di = (kh - 1) * dilate
            dj = (kw - 1) * dilate
            valid = (ii + di >= 0) & (ii + di < H) & (jj + dj >= 0) & (jj + dj < W)
            masks.append(valid.reshape(-1))
    return jnp.asarray(np.stack(masks).astype(np.float32))


def _make_kernel(H, W, D, dilate, neg_slope):
    S = H * W

    def kernel(x_ref, wr_ref, wc_ref, we_ref, mask_ref, o_ref, col_ref):
        x = x_ref[...]                                           # (Cin, S) f32

        # conv_reduce (1x1, no bias): bf16 operands, f32 accumulation; leaky_relu(0.2)
        b1 = jnp.dot(wr_ref[...], x.astype(jnp.bfloat16),
                     preferred_element_type=jnp.float32)          # (D, S) f32
        b1 = jnp.where(b1 > 0, b1, neg_slope * b1)

        # Build the im2col staging buffer for the 3x3 grouped conv: 9 rolled
        # copies of b1 (XLU), zeroed at image borders (= implicit zero padding).
        for kh in range(3):
            for kw in range(3):
                t = kh * 3 + kw
                d = ((kh - 1) * W + (kw - 1)) * dilate            # flat tap offset
                shifted = b1 if d == 0 else pltpu.roll(b1, shift=(-d) % S, axis=1)
                if not (kh == 1 and kw == 1):
                    shifted = shifted * mask_ref[t:t + 1, :]      # (1,S) bcast over D
                col_ref[t * D:(t + 1) * D, :] = shifted.astype(col_ref.dtype)

        # Grouped 3x3 conv as one fused K = 9*D matmul; leaky_relu(0.2)
        b2 = jnp.dot(wc_ref[...], col_ref[...],
                     preferred_element_type=jnp.float32)          # (D, S) f32
        b2 = jnp.where(b2 > 0, b2, neg_slope * b2)

        # conv_expand (1x1, no bias) + identity shortcut (stride == 1)
        expd = jnp.dot(we_ref[...], b2.astype(jnp.bfloat16),
                       preferred_element_type=jnp.float32)        # (Cout, S) f32
        o_ref[...] = (x + expd).astype(o_ref.dtype)

    return kernel


def resnetx_bottleneck(x, wr, wc_dense, we, *, dilate=1):
    """x: (B,Cin,H,W) f32; wr: (D,Cin); wc_dense: (D,D,3,3) block-diag dense grouped
    weight; we: (Cout,D).  stride == 1 (identity shortcut)."""
    B, Cin, H, W = x.shape
    D = wr.shape[0]
    Cout = we.shape[0]
    assert Cin == Cout, "identity shortcut requires Cin == Cout"
    # TODO(synk): stride != 1 (AvgPool2d shortcut + strided grouped conv) not
    # implemented; the Generator only instantiates ResNetXBottleneck with stride=1.
    S = H * W

    # Glue: free reshape only (no pad/crop HBM passes).
    x_flat = x.reshape(B, Cin, S)
    # (Dout, Din, kh, kw) -> (Dout, kh, kw, Din) -> (Dout, 9*Din); matches the
    # im2col row ordering built inside the kernel.
    wc_flat = jnp.transpose(wc_dense, (0, 2, 3, 1)).reshape(D, 9 * D)

    # bf16 matmul operands (accumulation stays f32 inside the kernel).
    wr_b = wr.astype(jnp.bfloat16)
    wc_b = wc_flat.astype(jnp.bfloat16)
    we_b = we.astype(jnp.bfloat16)
    tap_masks = _build_tap_masks(H, W, dilate)                    # (9, S) f32

    kernel = _make_kernel(H, W, D, dilate, 0.2)
    out_flat = pl.pallas_call(
        kernel,
        out_shape=jax.ShapeDtypeStruct((B, Cout, S), x.dtype),
        grid_spec=pltpu.PrefetchScalarGridSpec(
            num_scalar_prefetch=0,
            grid=(B,),  # for production feature maps add a parallel spatial axis (v7x megacore)
            in_specs=[
                pl.BlockSpec((None, Cin, S), lambda b: (b, 0, 0)),   # batch dim squeezed
                pl.BlockSpec((D, Cin), lambda b: (0, 0)),
                pl.BlockSpec((D, 9 * D), lambda b: (0, 0)),
                pl.BlockSpec((Cout, D), lambda b: (0, 0)),
                pl.BlockSpec((9, S), lambda b: (0, 0)),
            ],
            out_specs=pl.BlockSpec((None, Cout, S), lambda b: (b, 0, 0)),
            scratch_shapes=[pltpu.VMEM((9 * D, S), jnp.bfloat16)],   # im2col staging
        ),
        compiler_params=pltpu.CompilerParams(
            dimension_semantics=("parallel",),
        ),
    )(x_flat, wr_b, wc_b, we_b, tap_masks)

    return out_flat.reshape(B, Cout, H, W)


def _reference(x, wr, wg, we, cardinality, dilate=1):
    dn = ("NCHW", "OIHW", "NCHW")
    hp = lax.Precision.HIGHEST
    b = lax.conv_general_dilated(x, wr[:, :, None, None], (1, 1), "VALID",
                                 dimension_numbers=dn, precision=hp)
    b = jnp.where(b > 0, b, 0.2 * b)
    b = lax.conv_general_dilated(b, wg, (1, 1),
                                 ((dilate, dilate), (dilate, dilate)),
                                 rhs_dilation=(dilate, dilate),
                                 dimension_numbers=dn,
                                 feature_group_count=cardinality, precision=hp)
    b = jnp.where(b > 0, b, 0.2 * b)
    b = lax.conv_general_dilated(b, we[:, :, None, None], (1, 1), "VALID",
                                 dimension_numbers=dn, precision=hp)
    return x + b


if __name__ == "__main__":
    # Small config consistent with the module (stride=1 -> identity shortcut).
    # H*W = 256 keeps the kernel's lane dimension a multiple of 128 (unmasked stores).
    B, Cin, H, W = 2, 64, 16, 16
    Cout = 64
    cardinality = 8
    D = Cout // 2                      # 32
    Dg = D // cardinality              # per-group input channels (4)

    key = jax.random.PRNGKey(0)
    k1, k2, k3, kx = jax.random.split(key, 4)
    wr = jax.random.normal(k1, (D, Cin), jnp.float32) * 0.05          # conv_reduce (1x1)
    wg = jax.random.normal(k2, (D, Dg, 3, 3), jnp.float32) * 0.05     # conv_conv (grouped 3x3)
    we = jax.random.normal(k3, (Cout, D), jnp.float32) * 0.05         # conv_expand (1x1)
    x = jax.random.normal(kx, (B, Cin, H, W), jnp.float32)

    # Expand the grouped weight to an exactly-equivalent block-diagonal dense weight.
    grp = jnp.arange(D) // Dg
    mask = grp[:, None] == grp[None, :]                               # (D, D)
    wg_exp = wg[:, jnp.arange(D) % Dg, :, :]                          # (D, D, 3, 3)
    wc_dense = jnp.where(mask[:, :, None, None], wg_exp, 0.0)

    out = resnetx_bottleneck(x, wr, wc_dense, we, dilate=1)
    out = jax.block_until_ready(out)

    ref = _reference(x, wr, wg, we, cardinality, dilate=1)
    # bf16 matmul operands (f32 accumulation) vs an f32 HIGHEST-precision reference.
    if not jnp.allclose(out, ref, atol=1e-2, rtol=1e-2):
        max_err = jnp.max(jnp.abs(out - ref))
        raise AssertionError(f"Pallas output does not match reference (max abs err {max_err})")

    print("KERNEL_OK")
</pallas_src>

<mosaic_0001>
module attributes {stable_mosaic.version = 11 : i64} {
  func.func @kernel(%arg0: i32, %arg1: memref<1x64x256xf32, #tpu.memory_space<vmem>>, %arg2: memref<32x64xbf16, #tpu.memory_space<vmem>>, %arg3: memref<32x288xbf16, #tpu.memory_space<vmem>>, %arg4: memref<64x32xbf16, #tpu.memory_space<vmem>>, %arg5: memref<9x256xf32, #tpu.memory_space<vmem>>, %arg6: memref<1x64x256xf32, #tpu.memory_space<vmem>>, %arg7: memref<288x256xbf16, #tpu.memory_space<vmem>>) attributes {dimension_semantics = [#tpu.dimension_semantics<parallel>], iteration_bounds = array<i64: 2>, scalar_prefetch = 0 : i64, scratch_operands = 1 : i64, tpu.core_type = #tpu.core_type<tc>, window_params = [{transform_indices = @transform_0, window_bounds = array<i64: 1, 64, 256>}, {pipeline_mode = #tpu.pipeline_mode<synchronous>, transform_indices = @transform_1, window_bounds = array<i64: 32, 64>}, {pipeline_mode = #tpu.pipeline_mode<synchronous>, transform_indices = @transform_2, window_bounds = array<i64: 32, 288>}, {pipeline_mode = #tpu.pipeline_mode<synchronous>, transform_indices = @transform_3, window_bounds = array<i64: 64, 32>}, {pipeline_mode = #tpu.pipeline_mode<synchronous>, transform_indices = @transform_4, window_bounds = array<i64: 9, 256>}, {transform_indices = @transform_5, window_bounds = array<i64: 1, 64, 256>}]} {
    %c0 = arith.constant 0 : index
    %c0_0 = arith.constant 0 : index
    %c0_1 = arith.constant 0 : index
    %0 = vector.load %arg1[%c0, %c0_0, %c0_1] : memref<1x64x256xf32, #tpu.memory_space<vmem>>, vector<1x64x256xf32>
    %1 = vector.shape_cast %0 : vector<1x64x256xf32> to vector<64x256xf32>
    %c0_2 = arith.constant 0 : index
    %c0_3 = arith.constant 0 : index
    %2 = vector.load %arg2[%c0_2, %c0_3] : memref<32x64xbf16, #tpu.memory_space<vmem>>, vector<32x64xbf16>
    %3 = arith.truncf %1 : vector<64x256xf32> to vector<64x256xbf16>
    %cst = arith.constant dense<0.000000e+00> : vector<32x256xf32>
    %4 = tpu.matmul %2, %3, %cst {dimension_numbers = #tpu.dot_dimension_numbers<[1], [0], [0], [1], [0, 0, 1, 1], [], []>} : vector<32x64xbf16>, vector<64x256xbf16>, vector<32x256xf32> -> vector<32x256xf32>
    %cst_4 = arith.constant 0.000000e+00 : f32
    %5 = vector.broadcast %cst_4 : f32 to vector<32x256xf32>
    %6 = arith.cmpf ogt, %4, %5 : vector<32x256xf32>
    %cst_5 = arith.constant 2.000000e-01 : f32
    %7 = vector.broadcast %cst_5 : f32 to vector<32x256xf32>
    %8 = arith.mulf %7, %4 : vector<32x256xf32>
    %9 = arith.select %6, %4, %8 : vector<32x256xi1>, vector<32x256xf32>
    %c17_i32 = arith.constant 17 : i32
    %10 = tpu.dynamic_rotate %9 by %c17_i32 dim 1 : vector<32x256xf32>, i32 -> vector<32x256xf32>
    %c0_6 = arith.constant 0 : index
    %c0_7 = arith.constant 0 : index
    %11 = vector.load %arg5[%c0_6, %c0_7] : memref<9x256xf32, #tpu.memory_space<vmem>>, vector<1x256xf32>
    %12 = vector.broadcast %11 : vector<1x256xf32> to vector<32x256xf32>
    %13 = arith.mulf %10, %12 : vector<32x256xf32>
    %14 = arith.truncf %13 : vector<32x256xf32> to vector<32x256xbf16>
    %c0_8 = arith.constant 0 : index
    %c0_9 = arith.constant 0 : index
    %15 = vector.load %arg7[%c0_8, %c0_9] : memref<288x256xbf16, #tpu.memory_space<vmem>>, vector<32x256xbf16>
    tpu.vector_store %arg7[%c0_8, %c0_9], %14 {strides = array<i32>} : memref<288x256xbf16, #tpu.memory_space<vmem>>, vector<32x256xbf16>,
    %c16_i32 = arith.constant 16 : i32
    %16 = tpu.dynamic_rotate %9 by %c16_i32 dim 1 : vector<32x256xf32>, i32 -> vector<32x256xf32>
    %c1 = arith.constant 1 : index
    %c0_10 = arith.constant 0 : index
    %17 = vector.load %arg5[%c1, %c0_10] : memref<9x256xf32, #tpu.memory_space<vmem>>, vector<1x256xf32>
    %18 = vector.broadcast %17 : vector<1x256xf32> to vector<32x256xf32>
    %19 = arith.mulf %16, %18 : vector<32x256xf32>
    %20 = arith.truncf %19 : vector<32x256xf32> to vector<32x256xbf16>
    %c32 = arith.constant 32 : index
    %c0_11 = arith.constant 0 : index
    %21 = vector.load %arg7[%c32, %c0_11] : memref<288x256xbf16, #tpu.memory_space<vmem>>, vector<32x256xbf16>
    tpu.vector_store %arg7[%c32, %c0_11], %20 {strides = array<i32>} : memref<288x256xbf16, #tpu.memory_space<vmem>>, vector<32x256xbf16>,
    %c15_i32 = arith.constant 15 : i32
    %22 = tpu.dynamic_rotate %9 by %c15_i32 dim 1 : vector<32x256xf32>, i32 -> vector<32x256xf32>
    %c2 = arith.constant 2 : index
    %c0_12 = arith.constant 0 : index
    %23 = vector.load %arg5[%c2, %c0_12] : memref<9x256xf32, #tpu.memory_space<vmem>>, vector<1x256xf32>
    %24 = vector.broadcast %23 : vector<1x256xf32> to vector<32x256xf32>
    %25 = arith.mulf %22, %24 : vector<32x256xf32>
    %26 = arith.truncf %25 : vector<32x256xf32> to vector<32x256xbf16>
    %c64 = arith.constant 64 : index
    %c0_13 = arith.constant 0 : index
    %27 = vector.load %arg7[%c64, %c0_13] : memref<288x256xbf16, #tpu.memory_space<vmem>>, vector<32x256xbf16>
    tpu.vector_store %arg7[%c64, %c0_13], %26 {strides = array<i32>} : memref<288x256xbf16, #tpu.memory_space<vmem>>, vector<32x256xbf16>,
    %c1_i32 = arith.constant 1 : i32
    %28 = tpu.dynamic_rotate %9 by %c1_i32 dim 1 : vector<32x256xf32>, i32 -> vector<32x256xf32>
    %c3 = arith.constant 3 : index
    %c0_14 = arith.constant 0 : index
    %29 = vector.load %arg5[%c3, %c0_14] : memref<9x256xf32, #tpu.memory_space<vmem>>, vector<1x256xf32>
    %30 = vector.broadcast %29 : vector<1x256xf32> to vector<32x256xf32>
    %31 = arith.mulf %28, %30 : vector<32x256xf32>
    %32 = arith.truncf %31 : vector<32x256xf32> to vector<32x256xbf16>
    %c96 = arith.constant 96 : index
    %c0_15 = arith.constant 0 : index
    %33 = vector.load %arg7[%c96, %c0_15] : memref<288x256xbf16, #tpu.memory_space<vmem>>, vector<32x256xbf16>
    tpu.vector_store %arg7[%c96, %c0_15], %32 {strides = array<i32>} : memref<288x256xbf16, #tpu.memory_space<vmem>>, vector<32x256xbf16>,
    %34 = arith.truncf %9 : vector<32x256xf32> to vector<32x256xbf16>
    %c128 = arith.constant 128 : index
    %c0_16 = arith.constant 0 : index
    %35 = vector.load %arg7[%c128, %c0_16] : memref<288x256xbf16, #tpu.memory_space<vmem>>, vector<32x256xbf16>
    tpu.vector_store %arg7[%c128, %c0_16], %34 {strides = array<i32>} : memref<288x256xbf16, #tpu.memory_space<vmem>>, vector<32x256xbf16>,
    %c255_i32 = arith.constant 255 : i32
    %36 = tpu.dynamic_rotate %9 by %c255_i32 dim 1 : vector<32x256xf32>, i32 -> vector<32x256xf32>
    %c5 = arith.constant 5 : index
    %c0_17 = arith.constant 0 : index
    %37 = vector.load %arg5[%c5, %c0_17] : memref<9x256xf32, #tpu.memory_space<vmem>>, vector<1x256xf32>
    %38 = vector.broadcast %37 : vector<1x256xf32> to vector<32x256xf32>
    %39 = arith.mulf %36, %38 : vector<32x256xf32>
    %40 = arith.truncf %39 : vector<32x256xf32> to vector<32x256xbf16>
    %c160 = arith.constant 160 : index
    %c0_18 = arith.constant 0 : index
    %41 = vector.load %arg7[%c160, %c0_18] : memref<288x256xbf16, #tpu.memory_space<vmem>>, vector<32x256xbf16>
    tpu.vector_store %arg7[%c160, %c0_18], %40 {strides = array<i32>} : memref<288x256xbf16, #tpu.memory_space<vmem>>, vector<32x256xbf16>,
    %c241_i32 = arith.constant 241 : i32
    %42 = tpu.dynamic_rotate %9 by %c241_i32 dim 1 : vector<32x256xf32>, i32 -> vector<32x256xf32>
    %c6 = arith.constant 6 : index
    %c0_19 = arith.constant 0 : index
    %43 = vector.load %arg5[%c6, %c0_19] : memref<9x256xf32, #tpu.memory_space<vmem>>, vector<1x256xf32>
    %44 = vector.broadcast %43 : vector<1x256xf32> to vector<32x256xf32>
    %45 = arith.mulf %42, %44 : vector<32x256xf32>
    %46 = arith.truncf %45 : vector<32x256xf32> to vector<32x256xbf16>
    %c192 = arith.constant 192 : index
    %c0_20 = arith.constant 0 : index
    %47 = vector.load %arg7[%c192, %c0_20] : memref<288x256xbf16, #tpu.memory_space<vmem>>, vector<32x256xbf16>
    tpu.vector_store %arg7[%c192, %c0_20], %46 {strides = array<i32>} : memref<288x256xbf16, #tpu.memory_space<vmem>>, vector<32x256xbf16>,
    %c240_i32 = arith.constant 240 : i32
    %48 = tpu.dynamic_rotate %9 by %c240_i32 dim 1 : vector<32x256xf32>, i32 -> vector<32x256xf32>
    %c7 = arith.constant 7 : index
    %c0_21 = arith.constant 0 : index
    %49 = vector.load %arg5[%c7, %c0_21] : memref<9x256xf32, #tpu.memory_space<vmem>>, vector<1x256xf32>
    %50 = vector.broadcast %49 : vector<1x256xf32> to vector<32x256xf32>
    %51 = arith.mulf %48, %50 : vector<32x256xf32>
    %52 = arith.truncf %51 : vector<32x256xf32> to vector<32x256xbf16>
    %c224 = arith.constant 224 : index
    %c0_22 = arith.constant 0 : index
    %53 = vector.load %arg7[%c224, %c0_22] : memref<288x256xbf16, #tpu.memory_space<vmem>>, vector<32x256xbf16>
    tpu.vector_store %arg7[%c224, %c0_22], %52 {strides = array<i32>} : memref<288x256xbf16, #tpu.memory_space<vmem>>, vector<32x256xbf16>,
    %c239_i32 = arith.constant 239 : i32
    %54 = tpu.dynamic_rotate %9 by %c239_i32 dim 1 : vector<32x256xf32>, i32 -> vector<32x256xf32>
    %c8 = arith.constant 8 : index
    %c0_23 = arith.constant 0 : index
    %55 = vector.load %arg5[%c8, %c0_23] : memref<9x256xf32, #tpu.memory_space<vmem>>, vector<1x256xf32>
    %56 = vector.broadcast %55 : vector<1x256xf32> to vector<32x256xf32>
    %57 = arith.mulf %54, %56 : vector<32x256xf32>
    %58 = arith.truncf %57 : vector<32x256xf32> to vector<32x256xbf16>
    %c256 = arith.constant 256 : index
    %c0_24 = arith.constant 0 : index
    %59 = vector.load %arg7[%c256, %c0_24] : memref<288x256xbf16, #tpu.memory_space<vmem>>, vector<32x256xbf16>
    tpu.vector_store %arg7[%c256, %c0_24], %58 {strides = array<i32>} : memref<288x256xbf16, #tpu.memory_space<vmem>>, vector<32x256xbf16>,
    %c0_25 = arith.constant 0 : index
    %c0_26 = arith.constant 0 : index
    %60 = vector.load %arg3[%c0_25, %c0_26] : memref<32x288xbf16, #tpu.memory_space<vmem>>, vector<32x288xbf16>
    %c0_27 = arith.constant 0 : index
    %c0_28 = arith.constant 0 : index
    %61 = vector.load %arg7[%c0_27, %c0_28] : memref<288x256xbf16, #tpu.memory_space<vmem>>, vector<288x256xbf16>
    %cst_29 = arith.constant dense<0.000000e+00> : vector<32x256xf32>
    %62 = tpu.matmul %60, %61, %cst_29 {dimension_numbers = #tpu.dot_dimension_numbers<[1], [0], [0], [1], [0, 0, 1, 1], [], []>} : vector<32x288xbf16>, vector<288x256xbf16>, vector<32x256xf32> -> vector<32x256xf32>
    %cst_30 = arith.constant 0.000000e+00 : f32
    %63 = vector.broadcast %cst_30 : f32 to vector<32x256xf32>
    %64 = arith.cmpf ogt, %62, %63 : vector<32x256xf32>
    %cst_31 = arith.constant 2.000000e-01 : f32
    %65 = vector.broadcast %cst_31 : f32 to vector<32x256xf32>
    %66 = arith.mulf %65, %62 : vector<32x256xf32>
    %67 = arith.select %64, %62, %66 : vector<32x256xi1>, vector<32x256xf32>
    %c0_32 = arith.constant 0 : index
    %c0_33 = arith.constant 0 : index
    %68 = vector.load %arg4[%c0_32, %c0_33] : memref<64x32xbf16, #tpu.memory_space<vmem>>, vector<64x32xbf16>
    %69 = arith.truncf %67 : vector<32x256xf32> to vector<32x256xbf16>
    %cst_34 = arith.constant dense<0.000000e+00> : vector<64x256xf32>
    %70 = tpu.matmul %68, %69, %cst_34 {dimension_numbers = #tpu.dot_dimension_numbers<[1], [0], [0], [1], [0, 0, 1, 1], [], []>} : vector<64x32xbf16>, vector<32x256xbf16>, vector<64x256xf32> -> vector<64x256xf32>
    %71 = arith.addf %1, %70 : vector<64x256xf32>
    %c0_35 = arith.constant 0 : index
    %c0_36 = arith.constant 0 : index
    %c0_37 = arith.constant 0 : index
    %72 = vector.load %arg6[%c0_35, %c0_36, %c0_37] : memref<1x64x256xf32, #tpu.memory_space<vmem>>, vector<1x64x256xf32>
    %73 = vector.shape_cast %72 : vector<1x64x256xf32> to vector<64x256xf32>
    %74 = vector.shape_cast %71 : vector<64x256xf32> to vector<1x64x256xf32>
    tpu.vector_store %arg6[%c0_35, %c0_36, %c0_37], %74 {strides = array<i32>} : memref<1x64x256xf32, #tpu.memory_space<vmem>>, vector<1x64x256xf32>,
    return
  }
  func.func @transform_0(%arg0: i32) -> (i32, i32, i32) {
    %c0_i32 = arith.constant 0 : i32
    %c0_i32_0 = arith.constant 0 : i32
    %c0_i32_1 = arith.constant 0 : i32
    return %arg0, %c0_i32, %c0_i32_0 : i32, i32, i32
  }
  func.func @transform_1(%arg0: i32) -> (i32, i32) {
    %c0_i32 = arith.constant 0 : i32
    %c0_i32_0 = arith.constant 0 : i32
    %c0_i32_1 = arith.constant 0 : i32
    return %c0_i32, %c0_i32_0 : i32, i32
  }
  func.func @transform_2(%arg0: i32) -> (i32, i32) {
    %c0_i32 = arith.constant 0 : i32
    %c0_i32_0 = arith.constant 0 : i32
    %c0_i32_1 = arith.constant 0 : i32
    return %c0_i32, %c0_i32_0 : i32, i32
  }
  func.func @transform_3(%arg0: i32) -> (i32, i32) {
    %c0_i32 = arith.constant 0 : i32
    %c0_i32_0 = arith.constant 0 : i32
    %c0_i32_1 = arith.constant 0 : i32
    return %c0_i32, %c0_i32_0 : i32, i32
  }
  func.func @transform_4(%arg0: i32) -> (i32, i32) {
    %c0_i32 = arith.constant 0 : i32
    %c0_i32_0 = arith.constant 0 : i32
    %c0_i32_1 = arith.constant 0 : i32
    return %c0_i32, %c0_i32_0 : i32, i32
  }
  func.func @transform_5(%arg0: i32) -> (i32, i32, i32) {
    %c0_i32 = arith.constant 0 : i32
    %c0_i32_0 = arith.constant 0 : i32
    %c0_i32_1 = arith.constant 0 : i32
    return %arg0, %c0_i32, %c0_i32_0 : i32, i32, i32
  }
}

</mosaic_0001>

<bundles_post_ra>
// kernel: tpu_custom_call.1
= control target key start
LH: loop header
LB: loop body
LE: loop exit
PB: predicated region body
PF: predicated region fallthrough
CT: control target
= control target key end

     0   :  { %10 = vsyncpa [#allocation4], 0  ;;  %s2525_s0 = inlined_call_operand.hbm [shape: f32[2,64,256], index: 0, kind: input, shape index: {}]   ;;  %s2526_s1 = inlined_call_operand.hbm [shape: bf16[32,64], index: 1, kind: input, shape index: {}]   ;;  %s2527_s2 = inlined_call_operand.vmem [shape: bf16[32,288], index: 2, kind: input, shape index: {}]   ;;  %s2528_s3 = inlined_call_operand.vmem [shape: bf16[64,32], index: 3, kind: input, shape index: {}]   ;;  %s2529_s4 = inlined_call_operand.hbm [shape: f32[9,256], index: 4, kind: input, shape index: {}]   ;;  %s2530_s5 = inlined_call_operand.hbm [shape: f32[2,64,256], index: 5, kind: output, shape index: {}]  }
   0x1   :  { %12 = vsyncpa [#allocation4 + $0x1], 0 }
   0x2   :  { %13 = vsyncpa [#allocation7], 0 }
   0x3   :  { %14 = vsyncpa [#allocation5], 0 }
   0x4   :  { %16 = vsyncpa [#allocation5 + $0x1], 0  ;;  %s1667_s18 = smov 0   ;;  %s1669_s19 = smov 0  }
   0x5   :  { %s1671_s20 = smov 0   ;;  %s1673_s21 = smov 0  }
   0x6 LB: > { %s1688_s22 = sadd.s32 4294967295, %s1617_s21   ;;  %s1302_s23 = sadd.s32 4294967294, %s1617_s21   ;;  %s1617_s21 = sphi %s1673_s21, %s2577_s21   ;;  %s1613_s20 = sphi %s1671_s20, %s2576_s20   ;;  %s1609_s19 = sphi %s1669_s19, %s2575_s19   ;;  %s1605_s18 = sphi %s1667_s18, %s2574_s18  }
   0x7   : > { %p42_p0 = scmp.ne.s32.totalorder %s1609_s19, %s1605_s18  ;;  %p2531_p1 = scmp.eq.s32.totalorder %s1688_s22, 0 }
   0x8   : > { %p156_p3 = scmp.eq.s32.totalorder %s1302_s23, 1  ;;  %p1303_p5 = scmp.ge.s32.totalorder %s1617_s21, 1 }
   0x9   : > { %p1697_p4 = por %p2531_p1, %p42_p0  ;;  %p163_p7 = scmp.lt.s32.totalorder %s1617_s21, 3 }
   0xa   : > { %p1702_p6 = por %p156_p3, %p42_p0  ;;  %s1619_s27 = smov [#allocation6]  }
   0xb   : > { %s2542_s24 = scalar_select %p1697_p4, 1, 0 }
   0xc   : > { %s2543_s25 = scalar_select %p1702_p6, 1, 0 }
   0xd   : > { %p1707_p8 = pnand %p1303_p5, %p163_p7  ;;  %s175_s28 = sshll.u32 %s1619_s27, 4  ;;  %s1711_s28 = int_to_ptr.vmem [resolvable:$true] %s175_s28 }
   0xe   : > { %s1620_s30 = smov [#allocation8]   ;;  %s1461_s9 = scalar_lea.hbm %s2526_s1, 256 }
   0xf   : > { %p1362_p9 = pneg %p1707_p8  ;;  %s194_s6 = sshll.u32 %s1620_s30, 4  ;;  %s1722_s6 = int_to_ptr.vmem [resolvable:$true] %s194_s6 }
  0x10   : > { %p1462_p12 = scmp.ne.s32.totalorder %s2526_s1, %s1461_s9  ;;  %p1468_p5 = scmp.lt.u32.totalorder %s1461_s9, %s2526_s1 }
  0x11   : > { %p1718_p11 = pnand %p1362_p9, %p2531_p1 }
  0x13   : > { %p1463_p13 = pneg %p1718_p11 }
  0x15   : > { %p1464_p0 = pnand %p1463_p13, %p1462_p12 }
  0x17   : > { %p1465_p3 = pneg %p1464_p0 }
  0x19   : > { %p1470_p7 = pnand %p1468_p5, %p1465_p3 }
  0x1b   : > { %1473 = shalt.err (!%p1470_p7)
}
  0x1c   : > { %s1474_s14 = scalar_lea.vmem %s1711_s28, 256  ;;  %p1482_p2 = scmp.lt.s32.totalorder %s1711_s28, %s1711_s28 }
  0x1d   : > { %p1475_p9 = scmp.ne.s32.totalorder %s1711_s28, %s1474_s14  ;;  %p1483_p12 = scmp.lt.s32.totalorder %s1474_s14, %s1474_s14 }
  0x1f   : > { %p1477_p10 = pnand %p1475_p9, %p1463_p13  ;;  %p1484_p0 = por %p1483_p12, %p1482_p2 }
  0x21   : > { %p1478_p1 = pneg %p1477_p10 }
  0x23   : > { %p1485_p6 = pnand %p1484_p0, %p1478_p1 }
  0x25   : > { %1488 = shalt.err (!%p1485_p6)
}
  0x26   : > { %s1621_s15 = smov 64   ;;  %s1622_s16 = smov 4  }
  0x27   : > { %1365 = dma.hbm_to_vmem [thread:$0]  (!%p1718_p11), %s2526_s1, 256, %s1711_s28, [#allocation7], %s1621_s15, %s1621_s15, %s1622_s16  }
  0x28   : > { %s1489_s7 = scalar_lea.hbm %s2529_s4, 512 }
  0x29   : > { %p1490_p2 = scmp.ne.s32.totalorder %s2529_s4, %s1489_s7  ;;  %p1496_p10 = scmp.lt.u32.totalorder %s1489_s7, %s2529_s4 }
  0x2b   : > { %p1492_p1 = pnand %p1490_p2, %p1463_p13 }
  0x2d   : > { %p1493_p6 = pneg %p1492_p1 }
  0x2f   : > { %p1498_p3 = pnand %p1496_p10, %p1493_p6 }
  0x31   : > { %1501 = shalt.err (!%p1498_p3)
}
  0x32   : > { %s1502_s28 = scalar_lea.vmem %s1722_s6, 512  ;;  %p1510_p12 = scmp.lt.s32.totalorder %s1722_s6, %s1722_s6 }
  0x33   : > { %p1503_p5 = scmp.ne.s32.totalorder %s1722_s6, %s1502_s28  ;;  %p1511_p0 = scmp.lt.s32.totalorder %s1502_s28, %s1502_s28 }
  0x35   : > { %p1505_p7 = pnand %p1503_p5, %p1463_p13  ;;  %p1512_p2 = por %p1511_p0, %p1510_p12 }
  0x37   : > { %p1506_p9 = pneg %p1505_p7 }
  0x39   : > { %p1513_p1 = pnand %p1512_p2, %p1506_p9 }
  0x3b   : > { %1516 = shalt.err (!%p1513_p1)
}
  0x3c   : > { %s1623_s12 = smov 256   ;;  %s1624_s13 = smov 16  }
  0x3d   : > { %1368 = dma.hbm_to_vmem [thread:$0]  (!%p1718_p11), %s2529_s4, 512, %s1722_s6, [#allocation7], %s1623_s12, %s1623_s12, %s1624_s13  }
  0x3e   : > { %s1780_s16 = sadd.s32 1, %s1617_s21   ;;  %s29_s23 = sadd.s32 1, %s1613_s20 }
  0x3f   : > { %s26_s17 = ssub.s32 %s1617_s21, %s1780_s16  ;;  %p36_p6 = scmp.ne.s32.totalorder %s1613_s20, %s1609_s19 }
  0x40   : > { %p27_p13 = scmp.eq.s32.totalorder %s26_s17, 0  ;;  %p37_p10 = scmp.eq.s32.totalorder %s1617_s21, 0 }
  0x41   : > { %p2546_p5 = scmp.eq.s32.totalorder %s1688_s22, 1  ;;  %p1379_p9 = scmp.lt.s32.totalorder %s1617_s21, 2 }
  0x42   : > { %s1789_s27 = scalar_select %p27_p13, %s1613_s20, %s29_s23  }
  0x43   : > { %p38_p3 = por %p37_p10, %p36_p6  ;;  %p1793_p7 = por %p2546_p5, %p36_p6 }
  0x44   : > { %s208_s30 = sand.u32 1, %s1613_s20   ;;  %s1340_s6 = sshll.u32 %s1617_s21, 11 }
  0x45   : > { %s2547_s29 = scalar_select %p1793_p7, 1, 0 }
  0x46   : > { %s1307_s7 = sshll.u32 %s208_s30, 7  ;;  %s1803_s10 = scalar_lea.hbm %s2525_s0, %s1340_s6 }
  0x47   : > { %s212_s11 = scalar_lea.vmem [#allocation3], %s1307_s7  ;;  %p1807_p11 = pnand %p1379_p9, %p38_p3 }
  0x48   : > { %s219_s28 = sshll.u32 %s212_s11, 4  ;;  %s1811_s15 = scalar_lea.sflag [#allocation4], %s208_s30  ;;  %s1805_s28 = int_to_ptr.vmem [resolvable:$true] %s219_s28 }
  0x49   : > { %s1517_s17 = scalar_lea.hbm %s1803_s10, 2048  ;;  %p1519_p0 = pneg %p1807_p11 }
  0x4a   : > { %p1518_p12 = scmp.ne.s32.totalorder %s1803_s10, %s1517_s17  ;;  %s1522_s6 = scalar_lea.hbm %s2525_s0, 4096 }
  0x4b   : > { %p1523_p13 = scmp.lt.u32.totalorder %s1803_s10, %s2525_s0  ;;  %p1524_p6 = scmp.lt.u32.totalorder %s1522_s6, %s1517_s17 }
  0x4c   : > { %p1520_p2 = pnand %p1519_p0, %p1518_p12  ;;  %p1526_p3 = scmp.lt.u32.totalorder %s1517_s17, %s1803_s10 }
  0x4d   : > { %p1525_p10 = por %p1524_p6, %p1523_p13 }
  0x4e   : > { %p1521_p1 = pneg %p1520_p2 }
  0x4f   : > { %p1527_p5 = por %p1526_p3, %p1525_p10 }
  0x51   : > { %p1528_p9 = pnand %p1527_p5, %p1521_p1 }
  0x53   : > { %1531 = shalt.err (!%p1528_p9)
}
  0x54   : > { %s1532_s30 = scalar_lea.vmem %s1805_s28, 2048  ;;  %s1625_s11 = smov [#allocation3]  }
  0x55   : > { %p1533_p12 = scmp.ne.s32.totalorder %s1805_s28, %s1532_s30  ;;  %s1537_s23 = sshll.u32 %s1625_s11, 4  ;;  %s1538_s23 = int_to_ptr.vmem [resolvable:$false] %s1537_s23 }
  0x56   : > { %s1539_s7 = scalar_lea.vmem %s1538_s23, 4096  ;;  %p1540_p4 = scmp.lt.s32.totalorder %s1805_s28, %s1538_s23 }
  0x57   : > { %p1535_p2 = pnand %p1533_p12, %p1519_p0  ;;  %p1541_p13 = scmp.lt.s32.totalorder %s1539_s7, %s1532_s30 }
  0x59   : > { %p1536_p7 = pneg %p1535_p2  ;;  %p1542_p6 = por %p1541_p13, %p1540_p4 }
  0x5b   : > { %p1543_p10 = pnand %p1542_p6, %p1536_p7 }
  0x5d   : > { %1546 = shalt.err (!%p1543_p10)
}
  0x5e   : > { %1372 = dma.hbm_to_vmem [thread:$0]  (!%p1807_p11), %s1803_s10, 2048, %s1805_s28, %s1811_s15, %s1623_s12, %s1623_s12, %s1624_s13  }
  0x5f   : > { %231 = sbr.rel (%p1707_p8) target bundleno = 1082 (0x43a), region = 40 }
  0x66   : > { %s1845_s17 = sand.u32 1, %s1609_s19   ;;  %p2549_p4 = scmp.ne.s32.totalorder %s2542_s24, 0 }
  0x67   : > { %s1311_s6 = sshll.u32 %s1845_s17, 7  ;;  %s234_s8 = scalar_lea.sflag [#allocation4], %s1845_s17 }
  0x68   : > { %s1851_s14 = scalar_lea.vmem [#allocation3], %s1311_s6 }
  0x69   : > { %1592 = dma.done.wait (%p2549_p4), %s234_s8, 2048  }
  0x6a   : > { %1594 = vsyncadd (%p2549_p4), %s234_s8, 4294965248  ;;  %p2550_p7 = scmp.eq.s32.totalorder %s1688_s22, 0 }
  0x6c   : > { %1596 = dma.done.wait (%p2550_p7), [#allocation7], 768   ;;  %p2551_p8 = pmov %p2550_p7 }
  0x6d   : > { %v2534_v0 = vmov 0   ;;  %v274_v1 = vld [vmem:[%s1851_s14 + $0x8] sm:$0xff]  ;;  %v276_v2 = vld [vmem:[%s1851_s14 + $0x18] sm:$0xff]  ;;  %v273_v3 = vld [vmem:[%s1851_s14] sm:$0xff]  ;;  %vm311_vm0 = vcmask 523264   ;;  %s1627_s24 = smov 17   ;;  %v411_v61 = vlaneseq }
  0x6e   : > { %1598 = vsyncadd (%p2551_p8), [#allocation7], 4294966528  ;;  %350 = vmatprep.mubr.bf16.mxu0 %v2534_v0  ;;  %v294_v4 = vpack.c.bf16 %v276_v2, %v274_v1  ;;  %v275_v5 = vld [vmem:[%s1851_s14 + $0x10] sm:$0xff]  ;;  %v278_v6 = vld [vmem:[%s1851_s14 + $0x28] sm:$0xff]  ;;  %s1628_s26 = smov 16   ;;  %s1629_s12 = smov 15  }
  0x6f   : > { %v280_v7 = vld [vmem:[%s1851_s14 + $0x38] sm:$0xff]  ;;  %v293_v8 = vpack.c.bf16 %v275_v5, %v273_v3  ;;  %v277_v10 = vld [vmem:[%s1851_s14 + $0x20] sm:$0xff]  ;;  %v279_v11 = vld [vmem:[%s1851_s14 + $0x30] sm:$0xff]  ;;  %s1630_s13 = smov 1   ;;  %s1631_s10 = smov 127   ;;  %v425_v1 = vshrl.u32 %v411_v61, 7 }
  0x70   : > { %v296_v9 = vpack.c.bf16 %v280_v7, %v278_v6  ;;  %v282_v12 = vld [vmem:[%s1851_s14 + $0x48] sm:$0xff]  ;;  %318 = vmatprep.subr.bf16.mxu0 %v294_v4  ;;  %v284_v13 = vld [vmem:[%s1851_s14 + $0x58] sm:$0xff]  ;;  %v295_v14 = vpack.c.bf16 %v279_v11, %v277_v10  ;;  %v281_v15 = vld [vmem:[%s1851_s14 + $0x40] sm:$0xff]  ;;  %s1632_s28 = smov 113   ;;  %s1633_s15 = smov 112   ;;  %v2021_v3 = vand.u32 127, %v411_v61 }
  0x71   : > { %319 = vmatpush1.bf16.msra.mxu0 %v293_v8  ;;  %v283_v16 = vld [vmem:[%s1851_s14 + $0x50] sm:$0xff]  ;;  %v298_v17 = vpack.c.bf16 %v284_v13, %v282_v12  ;;  %v286_v18 = vld [vmem:[%s1851_s14 + $0x68] sm:$0xff]  ;;  %v288_v19 = vld [vmem:[%s1851_s14 + $0x78] sm:$0xff]  ;;  %s1634_s9 = smov 111   ;;  %v2023_v6 = vsub.s32 0, %v425_v1  ;;  %v2025_v7 = vsub.s32 1, %v425_v1 }
  0x72   : > { %320 = vmatprep.subr.bf16.mxu0 %v296_v9  ;;  %v285_v20 = vld [vmem:[%s1851_s14 + $0x60] sm:$0xff]  ;;  %v287_v21 = vld [vmem:[%s1851_s14 + $0x70] sm:$0xff]  ;;  %v297_v22 = vpack.c.bf16 %v283_v16, %v281_v15  ;;  %v300_v23 = vpack.c.bf16 %v288_v19, %v286_v18  ;;  %v1432_v26 = vld [vmem:[#allocation6 + $0x8] sm:$0xff]   ;;  %vm466_vm9 = vcmp.lt.s32.totalorder %v2021_v3, 16  ;;  %vm520_vm10 = vcmp.lt.s32.totalorder %v2021_v3, 15  ;;  %p2571_p0 = scmp.ne.s32.totalorder %s2547_s29, 0 }
  0x73   : > { %v299_v24 = vpack.c.bf16 %v287_v21, %v285_v20  ;;  %v1431_v25 = vld [vmem:[#allocation6] sm:$0xff]   ;;  %v476_v4 = vld [vmem:[#allocation8 + $0x1] ss:$8 sm:$0x3]  ;;  %vm574_vm11 = vcmp.lt.s32.totalorder %v2021_v3, 1  ;;  %vm636_vm12 = vcmp.lt.s32.totalorder %v2021_v3, 127 }
  0x74   : > { %v1435_v54 = vld [vmem:[%s2527_s2 + $0x4] ss:$12 sps:$4 sm:$0xff]   ;;  %v2031_v9 = vrot.slane %v476_v4, %v2023_v6  ;;  %v2034_v10 = vrot.slane %v476_v4, %v2025_v7  ;;  %vm413_vm13 = vcmp.lt.s32.totalorder %v2021_v3, 17  ;;  %vm690_vm14 = vcmp.lt.s32.totalorder %v2021_v3, 113  ;;  %s1635_s23 = smov [#allocation9]  }
  0x75   : > { %321 = vmatpush1.bf16.msra.mxu0 %v295_v14  ;;  %949 = vmatprep.mubr.bf16.mxu1 %v1435_v54  ;;  %v530_v11 = vld [vmem:[#allocation8 + $0x2] ss:$8 sm:$0x3]  ;;  %v584_v20 = vld [vmem:[#allocation8 + $0x3] ss:$8 sm:$0x3] }
  0x76   : > { %322 = vmatprep.subr.bf16.mxu0 %v298_v17  ;;  %v2042_v16 = vrot.slane %v530_v11, %v2023_v6  ;;  %v2045_v17 = vrot.slane %v530_v11, %v2025_v7  ;;  %v422_v54 = vld [vmem:[#allocation8] ss:$8 sm:$0x3]  ;;  %vm798_vm15 = vcmp.lt.s32.totalorder %v2021_v3, 111  ;;  %s1551_s7 = sshll.u32 %s1635_s23, 4  ;;  %s1552_s7 = int_to_ptr.vmem [resolvable:$false] %s1551_s7 }
  0x77   : > { %s1553_s8 = scalar_lea.vmem %s1552_s7, 4096 }
  0x79   : > { %323 = vmatpush1.bf16.msra.mxu0 %v297_v22 }
  0x7a   : > { %324 = vmatprep.subr.bf16.mxu0 %v300_v23 }
  0x7d   : > { %325 = vmatpush1.bf16.msra.mxu0 %v299_v24 }
  0x80   : > { %1317 = vmatmul.mubr.msk.bf16.vlgmr.msra.gmra.mrb[0].mxu0 %vm311_vm0, %v1431_v25 }
  0x81   : > { %360 = vmatprep.mubr.bf16.mxu0 %v2534_v0 }
  0x88   : > { %1318 = vmatmul.mubr.msk.bf16.gmra.mrb[4].mxu0 %vm311_vm0, %v1432_v26  ;;  %vm744_vm0 = vcmp.lt.s32.totalorder %v2021_v3, 112  ;;  %v1436_v3 = vld [vmem:[%s2527_s2 + $0x8] ss:$12 sps:$4 sm:$0xff]  }
  0x89   : > { %1002 = vmatprep.mubr.bf16.mxu0 %v2534_v0 }
 0x153   : > { %v352_v27 = vpop.f32.mrb[0].mxu0 }
 0x154   : > { %vm371_vm1 = vcmp.gt.f32.partialorder %v352_v27, 0.0  ;;  %v379_v28 = vmul.f32 0.2, %v352_v27  ;;  %v354_v29 = vpop.f32.mrb[1].mxu0 }
 0x155   : > { %vm372_vm2 = vcmp.gt.f32.partialorder %v354_v29, 0.0  ;;  %v380_v30 = vmul.f32 0.2, %v354_v29  ;;  %v356_v31 = vpop.f32.mrb[2].mxu0 }
 0x156   : > { %v1880_v32 = vsel %vm371_vm1, %v352_v27, %v379_v28  ;;  %v358_v33 = vpop.f32.mrb[3].mxu0  ;;  %v381_v35 = vmul.f32 0.2, %v356_v31  ;;  %vm373_vm3 = vcmp.gt.f32.partialorder %v356_v31, 0.0  ;;  %v2069_v28 = vrot.slane %v584_v20, %v2023_v6 }
 0x157   : > { %v1882_v34 = vsel %vm372_vm2, %v354_v29, %v380_v30  ;;  %395 = vrot.lane.b32.xlu0 %v1880_v32, %s1627_s24  ;;  %v382_v41 = vmul.f32 0.2, %v358_v33  ;;  %vm374_vm4 = vcmp.gt.f32.partialorder %v358_v33, 0.0  ;;  %v646_v30 = vld [vmem:[#allocation8 + $0x5] ss:$8 sm:$0x3] }
 0x158   : > { %403 = vrot.lane.b32.xlu1 %v1882_v34, %s1627_s24  ;;  %v1888_v36 = vsel %vm373_vm3, %v356_v31, %v381_v35  ;;  %v2076_v35 = vrot.slane %v584_v20, %v2025_v7  ;;  %v431_v20 = vrot.slane %v422_v54, %v2025_v7  ;;  %vm910_vm1 = vcmask 261120  }
 0x159   : > { %v1910_v42 = vsel %vm374_vm4, %v358_v33, %v382_v41 }
 0x15b   : > { %450 = vrot.lane.b32.xlu0 %v1880_v32, %s1628_s26  ;;  %v362_v37 = vpop.f32.mrb[4].mxu0 }
 0x15c   : > { %452 = vrot.lane.b32.xlu1 %v1888_v36, %s1628_s26  ;;  %v364_v38 = vpop.f32.mrb[5].mxu0  ;;  %v383_v43 = vmul.f32 0.2, %v362_v37  ;;  %vm375_vm5 = vcmp.gt.f32.partialorder %v362_v37, 0.0 }
 0x15d   : > { %v366_v39 = vpop.f32.mrb[6].mxu0  ;;  %v384_v47 = vmul.f32 0.2, %v364_v38  ;;  %vm376_vm7 = vcmp.gt.f32.partialorder %v364_v38, 0.0 }
 0x15e   : > { %v368_v40 = vpop.f32.mrb[7].mxu0  ;;  %v385_v44 = vmul.f32 0.2, %v366_v39  ;;  %vm377_vm6 = vcmp.gt.f32.partialorder %v366_v39, 0.0  ;;  %v1936_v45 = vsel %vm375_vm5, %v362_v37, %v383_v43 }
 0x15f   : > { %504 = vrot.lane.b32.xlu0 %v1880_v32, %s1629_s12  ;;  %v386_v48 = vmul.f32 0.2, %v368_v40  ;;  %vm378_vm8 = vcmp.gt.f32.partialorder %v368_v40, 0.0  ;;  %v1960_v49 = vsel %vm376_vm7, %v364_v38, %v384_v47 }
 0x160   : > { %506 = vrot.lane.b32.xlu1 %v1888_v36, %s1629_s12  ;;  %v1938_v46 = vsel %vm377_vm6, %v366_v39, %v385_v44 }
 0x161   : > { %v1962_v50 = vsel %vm378_vm8, %v368_v40, %v386_v48  ;;  %v2101_v48 = vrot.slane %v646_v30, %v2023_v6 }
 0x163   : > { %558 = vrot.lane.b32.xlu0 %v1880_v32, %s1630_s13 }
 0x164   : > { %560 = vrot.lane.b32.xlu1 %v1888_v36, %s1630_s13 }
 0x167   : > { %620 = vrot.lane.b32.xlu0 %v1880_v32, %s1631_s10 }
 0x168   : > { %622 = vrot.lane.b32.xlu1 %v1888_v36, %s1631_s10 }
 0x16b   : > { %674 = vrot.lane.b32.xlu0 %v1880_v32, %s1632_s28 }
 0x16c   : > { %676 = vrot.lane.b32.xlu1 %v1888_v36, %s1632_s28 }
 0x16f   : > { %458 = vrot.lane.b32.xlu0 %v1882_v34, %s1628_s26 }
 0x170   : > { %405 = vrot.lane.b32.xlu1 %v1910_v42, %s1627_s24 }
 0x173   : > { %512 = vrot.lane.b32.xlu0 %v1882_v34, %s1629_s12 }
 0x174   : > { %460 = vrot.lane.b32.xlu1 %v1910_v42, %s1628_s26 }
 0x177   : > { %566 = vrot.lane.b32.xlu0 %v1882_v34, %s1630_s13 }
 0x178   : > { %514 = vrot.lane.b32.xlu1 %v1910_v42, %s1629_s12 }
 0x17b   : > { %628 = vrot.lane.b32.xlu0 %v1882_v34, %s1631_s10 }
 0x17c   : > { %568 = vrot.lane.b32.xlu1 %v1910_v42, %s1630_s13 }
 0x17f   : > { %682 = vrot.lane.b32.xlu0 %v1882_v34, %s1632_s28 }
 0x180   : > { %630 = vrot.lane.b32.xlu1 %v1910_v42, %s1631_s10 }
 0x183   : > { %397 = vrot.lane.b32.xlu0 %v1888_v36, %s1627_s24 }
 0x184   : > { %684 = vrot.lane.b32.xlu1 %v1910_v42, %s1632_s28 }
 0x187   : > { %399 = vrot.lane.b32.xlu0 %v1936_v45, %s1627_s24 }
 0x188   : > { %401 = vrot.lane.b32.xlu1 %v1938_v46, %s1627_s24 }
 0x18b   : > { %454 = vrot.lane.b32.xlu0 %v1936_v45, %s1628_s26 }
 0x18c   : > { %456 = vrot.lane.b32.xlu1 %v1938_v46, %s1628_s26 }
 0x18f   : > { %508 = vrot.lane.b32.xlu0 %v1936_v45, %s1629_s12 }
 0x190   : > { %510 = vrot.lane.b32.xlu1 %v1938_v46, %s1629_s12 }
 0x193   : > { %562 = vrot.lane.b32.xlu0 %v1936_v45, %s1630_s13 }
 0x194   : > { %564 = vrot.lane.b32.xlu1 %v1938_v46, %s1630_s13 }
 0x197   : > { %624 = vrot.lane.b32.xlu0 %v1936_v45, %s1631_s10 }
 0x198   : > { %626 = vrot.lane.b32.xlu1 %v1938_v46, %s1631_s10 }
 0x19b   : > { %407 = vrot.lane.b32.xlu0 %v1960_v49, %s1627_s24 }
 0x19c   : > { %409 = vrot.lane.b32.xlu1 %v1962_v50, %s1627_s24 }
 0x19f   : > { %678 = vrot.lane.b32.xlu0 %v1936_v45, %s1632_s28 }
 0x1a0   : > { %680 = vrot.lane.b32.xlu1 %v1938_v46, %s1632_s28 }
 0x1a3   : > { %462 = vrot.lane.b32.xlu0 %v1960_v49, %s1628_s26 }
 0x1a4   : > { %464 = vrot.lane.b32.xlu1 %v1962_v50, %s1628_s26 }
 0x1a7   : > { %516 = vrot.lane.b32.xlu0 %v1960_v49, %s1629_s12 }
 0x1a8   : > { %730 = vrot.lane.b32.xlu1 %v1888_v36, %s1633_s15 }
 0x1ab   : > { %570 = vrot.lane.b32.xlu0 %v1960_v49, %s1630_s13 }
 0x1ac   : > { %518 = vrot.lane.b32.xlu1 %v1962_v50, %s1629_s12 }
 0x1af   : > { %632 = vrot.lane.b32.xlu0 %v1960_v49, %s1631_s10 }
 0x1b0   : > { %738 = vrot.lane.b32.xlu1 %v1910_v42, %s1633_s15 }
 0x1b3   : > { %686 = vrot.lane.b32.xlu0 %v1960_v49, %s1632_s28 }
 0x1b4   : > { %572 = vrot.lane.b32.xlu1 %v1962_v50, %s1630_s13 }
 0x1b7   : > { %728 = vrot.lane.b32.xlu0 %v1880_v32, %s1633_s15 }
 0x1b8   : > { %784 = vrot.lane.b32.xlu1 %v1888_v36, %s1634_s9 }
 0x1bb   : > { %736 = vrot.lane.b32.xlu0 %v1882_v34, %s1633_s15 }
 0x1bc   : > { %792 = vrot.lane.b32.xlu1 %v1910_v42, %s1634_s9 }
 0x1bf   : > { %782 = vrot.lane.b32.xlu0 %v1880_v32, %s1634_s9 }
 0x1c0   : > { %734 = vrot.lane.b32.xlu1 %v1938_v46, %s1633_s15 }
 0x1c3   : > { %790 = vrot.lane.b32.xlu0 %v1882_v34, %s1634_s9 }
 0x1c4   : > { %634 = vrot.lane.b32.xlu1 %v1962_v50, %s1631_s10  ;;  %s2441_s10 = scalar_lea.vmem [#allocation9], %s1311_s6  ;;  %s1341_s6 = sshll.u32 %s1688_s22, 11 }
 0x1c5   : > { %s2474_s30 = scalar_lea.hbm %s2530_s5, %s1341_s6  ;;  %s1197_s22 = scalar_lea.sflag [#allocation5], %s1845_s17 }
 0x1c7   : > { %732 = vrot.lane.b32.xlu0 %v1936_v45, %s1633_s15 }
 0x1c8   : > { %788 = vrot.lane.b32.xlu1 %v1938_v46, %s1634_s9 }
 0x1c9   : > { %v2001_v51 = vpop.permute.xlu0 %395 }
 0x1ca   : > { %v2003_v52 = vpop.permute.xlu1 %403 }
 0x1cb   : > { %740 = vrot.lane.b32.xlu0 %v1960_v49, %s1633_s15 }
 0x1cc   : > { %688 = vrot.lane.b32.xlu1 %v1962_v50, %s1632_s28  ;;  %s1210_s28 = sshll.u32 %s2441_s10, 4  ;;  %s2478_s28 = int_to_ptr.vmem [resolvable:$true] %s1210_s28 }
 0x1cd   : > { %v451_v53 = vpop.permute.xlu0 %450  ;;  %s1547_s11 = scalar_lea.vmem %s2478_s28, 2048  ;;  %p1554_p5 = scmp.lt.s32.totalorder %s2478_s28, %s1552_s7 }
 0x1ce   : > { %v453_v55 = vpop.permute.xlu1 %452  ;;  %p1548_p11 = scmp.ne.s32.totalorder %s2478_s28, %s1547_s11  ;;  %p1555_p9 = scmp.lt.s32.totalorder %s1553_s8, %s1547_s11 }
 0x1cf   : > { %786 = vrot.lane.b32.xlu0 %v1936_v45, %s1634_s9 }
 0x1d0   : > { %742 = vrot.lane.b32.xlu1 %v1962_v50, %s1633_s15  ;;  %p1549_p1 = pnand %p1548_p11, %p2571_p0  ;;  %p1556_p12 = por %p1555_p9, %p1554_p5 }
 0x1d1   : > { %v505_v56 = vpop.permute.xlu0 %504 }
 0x1d2   : > { %v507_v57 = vpop.permute.xlu1 %506  ;;  %p1550_p3 = pneg %p1549_p1 }
 0x1d3   : > { %794 = vrot.lane.b32.xlu0 %v1960_v49, %s1634_s9 }
 0x1d4   : > { %796 = vrot.lane.b32.xlu1 %v1962_v50, %s1634_s9  ;;  %p1557_p2 = pnand %p1556_p12, %p1550_p3 }
 0x1d5   : > { %v559_v58 = vpop.permute.xlu0 %558 }
 0x1d6   : > { %v561_v59 = vpop.permute.xlu1 %560 }
 0x1d9   : > { %v621_v60 = vpop.permute.xlu0 %620 }
 0x1da   : > { %v2015_v62 = vpop.permute.xlu1 %622 }
 0x1dd   : > { %v2017_v63 = vpop.permute.xlu0 %674 }
 0x1de   : > { %v2019_v2 = vpop.permute.xlu1 %676 }
 0x1e1   : > { %v459_v5 = vpop.permute.xlu0 %458 }
 0x1e2   : > { %v2028_v8 = vpop.permute.xlu1 %405  ;;  %v467_v12 = vsel %vm466_vm9, %v451_v53, %v459_v5  ;;  %v471_v13 = vsel %vm466_vm9, %v459_v5, %v451_v53 }
 0x1e3   : > { %v2052_v21 = vmul.f32 %v2031_v9, %v471_v13  ;;  %v2055_v22 = vmul.f32 %v2034_v10, %v467_v12 }
 0x1e5   : > { %v513_v14 = vpop.permute.xlu0 %512 }
 0x1e6   : > { %v461_v15 = vpop.permute.xlu1 %460  ;;  %v521_v25 = vsel %vm520_vm10, %v505_v56, %v513_v14  ;;  %v525_v26 = vsel %vm520_vm10, %v513_v14, %v505_v56  ;;  %v700_v14 = vld [vmem:[#allocation8 + $0x6] ss:$8 sm:$0x3] }
 0x1e7   : > { %v468_v18 = vsel %vm466_vm9, %v453_v55, %v461_v15  ;;  %v472_v19 = vsel %vm466_vm9, %v461_v15, %v453_v55  ;;  %v2084_v39 = vmul.f32 %v2042_v16, %v525_v26  ;;  %v2087_v40 = vmul.f32 %v2045_v17, %v521_v25 }
 0x1e8   : > { %v2058_v23 = vmul.f32 %v2031_v9, %v472_v19  ;;  %v2061_v24 = vmul.f32 %v2034_v10, %v468_v18  ;;  %v427_v15 = vrot.slane %v422_v54, %v2023_v6  ;;  %v418_v18 = vsel %vm413_vm13, %v2003_v52, %v2001_v51 }
 0x1e9   : > { %v567_v27 = vpop.permute.xlu0 %566 }
 0x1ea   : > { %v515_v29 = vpop.permute.xlu1 %514  ;;  %v575_v44 = vsel %vm574_vm11, %v559_v58, %v567_v27  ;;  %v579_v47 = vsel %vm574_vm11, %v567_v27, %v559_v58  ;;  %v2112_v58 = vrot.slane %v646_v30, %v2025_v7  ;;  %v434_v54 = vmul.f32 %v427_v15, %v418_v18 }
 0x1eb   : > { %v522_v37 = vsel %vm520_vm10, %v507_v57, %v515_v29  ;;  %v526_v38 = vsel %vm520_vm10, %v515_v29, %v507_v57  ;;  %v2123_v11 = vmul.f32 %v2076_v35, %v575_v44 }
 0x1ec   : > { %v2090_v41 = vmul.f32 %v2042_v16, %v526_v38  ;;  %v2093_v43 = vmul.f32 %v2045_v17, %v522_v37 }
 0x1ed   : > { %v629_v53 = vpop.permute.xlu0 %628 }
 0x1ee   : > { %v637_v55 = vsel %vm636_vm12, %v621_v60, %v629_v53  ;;  %v641_v56 = vsel %vm636_vm12, %v629_v53, %v621_v60  ;;  %v569_v57 = vpop.permute.xlu1 %568  ;;  %v2120_v60 = vmul.f32 %v2069_v28, %v579_v47 }
 0x1ef   : > { %v576_v4 = vsel %vm574_vm11, %v561_v59, %v569_v57  ;;  %v580_v5 = vsel %vm574_vm11, %v569_v57, %v561_v59  ;;  %v414_v59 = vsel %vm413_vm13, %v2001_v51, %v2003_v52  ;;  %v2152_v51 = vrot.slane %v700_v14, %v2023_v6 }
 0x1f0   : > { %v2126_v12 = vmul.f32 %v2069_v28, %v580_v5  ;;  %v2129_v13 = vmul.f32 %v2076_v35, %v576_v4  ;;  %v2155_v52 = vrot.slane %v700_v14, %v2025_v7  ;;  %v2164_v38 = vmul.f32 %v2101_v48, %v637_v55 }
 0x1f1   : > { %v683_v19 = vpop.permute.xlu0 %682  ;;  %2552 = vst [vmem:[#allocation13_spill] sm:$0xff] %v2152_v51  ;;  %v2167_v44 = vmul.f32 %v2112_v58, %v641_v56  ;;  %v435_v4 = vmul.f32 %v431_v20, %v414_v59 }
 0x1f2   : > { %v691_v25 = vsel %vm690_vm14, %v2017_v63, %v683_v19  ;;  %v695_v26 = vsel %vm690_vm14, %v683_v19, %v2017_v63  ;;  %v631_v27 = vpop.permute.xlu1 %630  ;;  %2553 = vst [vmem:[#allocation14_spill] sm:$0xff] %v2155_v52 }
 0x1f3   : > { %v638_v37 = vsel %vm636_vm12, %v2015_v62, %v631_v27  ;;  %v642_v63 = vsel %vm636_vm12, %v631_v27, %v2015_v62 }
 0x1f4   : > { %v2170_v47 = vmul.f32 %v2101_v48, %v638_v37  ;;  %v2173_v53 = vmul.f32 %v2112_v58, %v642_v63  ;;  %v2192_v37 = vmul.f32 %v2152_v51, %v691_v25 }
 0x1f5   : > { %v398_v57 = vpop.permute.xlu0 %397 }
 0x1f6   : > { %v415_v5 = vsel %vm413_vm13, %v398_v57, %v2028_v8  ;;  %v419_v62 = vsel %vm413_vm13, %v2028_v8, %v398_v57  ;;  %v685_v55 = vpop.permute.xlu1 %684  ;;  %2554 = vst [vmem:[#allocation15_spill] sm:$0xff] %v2192_v37  ;;  %v2195_v8 = vmul.f32 %v2155_v52, %v695_v26 }
 0x1f7   : > { %v436_v19 = vmul.f32 %v427_v15, %v419_v62  ;;  %v692_v59 = vsel %vm690_vm14, %v2019_v2, %v685_v55  ;;  %v696_v18 = vsel %vm690_vm14, %v685_v55, %v2019_v2  ;;  %v437_v27 = vmul.f32 %v431_v20, %v415_v5 }
 0x1f8   : > { %v2198_v63 = vmul.f32 %v2152_v51, %v692_v59  ;;  %v2201_v57 = vmul.f32 %v2155_v52, %v696_v18 }
 0x1f9   : > { %v400_v62 = vpop.permute.xlu0 %399  ;;  %v443_v0 = vpack.c.bf16 %v437_v27, %v435_v4  ;;  %v442_v14 = vpack.c.bf16 %v436_v19, %v434_v54 }
 0x1fa   : > { %2555 = vst [vmem:[#allocation16_spill] sm:$0xff] %v2198_v63  ;;  %v402_v56 = vpop.permute.xlu1 %401 }
 0x1fb   : > { %917 = vmatprep.subr.bf16.mxu1 %v443_v0 }
 0x1fc   : > { %918 = vmatpush1.bf16.msra.mxu1 %v442_v14 }
 0x1fd   : > { %v455_v26 = vpop.permute.xlu0 %454 }
 0x1fe   : > { %v457_v5 = vpop.permute.xlu1 %456 }
 0x201   : > { %v509_v55 = vpop.permute.xlu0 %508 }
 0x202   : > { %v511_v59 = vpop.permute.xlu1 %510 }
 0x205   : > { %v563_v30 = vpop.permute.xlu0 %562 }
 0x206   : > { %v565_v29 = vpop.permute.xlu1 %564 }
 0x209   : > { %v2207_v18 = vpop.permute.xlu0 %624 }
 0x20a   : > { %v2209_v1 = vpop.permute.xlu1 %626 }
 0x20d   : > { %v408_v54 = vpop.permute.xlu0 %407 }
 0x20e   : > { %v416_v4 = vsel %vm413_vm13, %v400_v62, %v408_v54  ;;  %v420_v19 = vsel %vm413_vm13, %v408_v54, %v400_v62  ;;  %v410_v27 = vpop.permute.xlu1 %409 }
 0x20f   : > { %v438_v0 = vmul.f32 %v427_v15, %v420_v19  ;;  %v439_v14 = vmul.f32 %v431_v20, %v416_v4  ;;  %v417_v25 = vsel %vm413_vm13, %v402_v56, %v410_v27  ;;  %v421_v2 = vsel %vm413_vm13, %v410_v27, %v402_v56 }
 0x210   : > { %v440_v61 = vmul.f32 %v427_v15, %v421_v2  ;;  %v441_v33 = vmul.f32 %v431_v20, %v417_v25  ;;  %v2556_v56 = vpack.c.bf16 %v2061_v24, %v2055_v22  ;;  %v2557_v22 = vpack.c.bf16 %v2058_v23, %v2052_v21 }
 0x211   : > { %v2219_v31 = vpop.permute.xlu0 %678 }
 0x212   : > { %v2221_v37 = vpop.permute.xlu1 %680  ;;  %v445_v63 = vpack.c.bf16 %v441_v33, %v439_v14  ;;  %v444_v52 = vpack.c.bf16 %v440_v61, %v438_v0 }
 0x214   : > { %919 = vmatprep.subr.bf16.mxu1 %v445_v63 }
 0x215   : > { %v463_v51 = vpop.permute.xlu0 %462  ;;  %920 = vmatpush1.bf16.msra.mxu1 %v444_v52 }
 0x216   : > { %v469_v62 = vsel %vm466_vm9, %v455_v26, %v463_v51  ;;  %v473_v54 = vsel %vm466_vm9, %v463_v51, %v455_v26  ;;  %921 = vmatprep.subr.bf16.mxu1 %v2556_v56  ;;  %v465_v15 = vpop.permute.xlu1 %464 }
 0x217   : > { %v492_v20 = vmul.f32 %v2031_v9, %v473_v54  ;;  %v493_v2 = vmul.f32 %v2034_v10, %v469_v62  ;;  %v470_v33 = vsel %vm466_vm9, %v457_v5, %v465_v15  ;;  %v474_v61 = vsel %vm466_vm9, %v465_v15, %v457_v5 }
 0x218   : > { %v494_v52 = vmul.f32 %v2031_v9, %v474_v61  ;;  %v495_v63 = vmul.f32 %v2034_v10, %v470_v33  ;;  %v2558_v9 = vpack.c.bf16 %v2093_v43, %v2087_v40  ;;  %v2559_v40 = vpack.c.bf16 %v2090_v41, %v2084_v39 }
 0x219   : > { %v517_v51 = vpop.permute.xlu0 %516  ;;  %922 = vmatpush1.bf16.msra.mxu1 %v2557_v22 }
 0x21a   : > { %v2241_v24 = vpop.permute.xlu1 %730  ;;  %v499_v25 = vpack.c.bf16 %v495_v63, %v493_v2  ;;  %v498_v26 = vpack.c.bf16 %v494_v52, %v492_v20  ;;  %v523_v4 = vsel %vm520_vm10, %v509_v55, %v517_v51  ;;  %v527_v5 = vsel %vm520_vm10, %v517_v51, %v509_v55 }
 0x21b   : > { %v546_v27 = vmul.f32 %v2042_v16, %v527_v5  ;;  %v547_v0 = vmul.f32 %v2045_v17, %v523_v4 }
 0x21c   : > { %923 = vmatprep.subr.bf16.mxu1 %v499_v25 }
 0x21d   : > { %v571_v19 = vpop.permute.xlu0 %570  ;;  %924 = vmatpush1.bf16.msra.mxu1 %v498_v26 }
 0x21e   : > { %925 = vmatprep.subr.bf16.mxu1 %v2558_v9  ;;  %v519_v10 = vpop.permute.xlu1 %518  ;;  %v581_v15 = vsel %vm574_vm11, %v571_v19, %v563_v30 }
 0x21f   : > { %v524_v21 = vsel %vm520_vm10, %v511_v59, %v519_v10  ;;  %v528_v23 = vsel %vm520_vm10, %v519_v10, %v511_v59  ;;  %v577_v59 = vsel %vm574_vm11, %v563_v30, %v571_v19  ;;  %v600_v2 = vmul.f32 %v2069_v28, %v581_v15 }
 0x220   : > { %v548_v14 = vmul.f32 %v2042_v16, %v528_v23  ;;  %v549_v55 = vmul.f32 %v2045_v17, %v524_v21  ;;  %v2560_v16 = vpack.c.bf16 %v2129_v13, %v2123_v11  ;;  %v601_v33 = vmul.f32 %v2076_v35, %v577_v59 }
 0x221   : > { %v633_v62 = vpop.permute.xlu0 %632  ;;  %926 = vmatpush1.bf16.msra.mxu1 %v2559_v40  ;;  %v2561_v11 = vpack.c.bf16 %v2126_v12, %v2120_v60  ;;  %v615_v60 = vpack.c.bf16 %v1962_v50, %v1960_v49  ;;  %v2562_v21 = vpack.c.bf16 %v2173_v53, %v2167_v44 }
 0x222   : > { %v2261_v43 = vpop.permute.xlu1 %738  ;;  %v553_v54 = vpack.c.bf16 %v549_v55, %v547_v0  ;;  %v552_v56 = vpack.c.bf16 %v548_v14, %v546_v27  ;;  %v639_v49 = vsel %vm636_vm12, %v2207_v18, %v633_v62  ;;  %v643_v50 = vsel %vm636_vm12, %v633_v62, %v2207_v18 }
 0x223   : > { %v662_v14 = vmul.f32 %v2101_v48, %v639_v49  ;;  %v663_v55 = vmul.f32 %v2112_v58, %v643_v50 }
 0x224   : > { %927 = vmatprep.subr.bf16.mxu1 %v553_v54  ;;  %v2563_v54 = vpack.c.bf16 %v2170_v47, %v2164_v38 }
 0x225   : > { %v2267_v20 = vpop.permute.xlu0 %686  ;;  %928 = vmatpush1.bf16.msra.mxu1 %v552_v56 }
 0x226   : > { %929 = vmatprep.subr.bf16.mxu1 %v2560_v16  ;;  %v573_v17 = vpop.permute.xlu1 %572 }
 0x227   : > { %v578_v39 = vsel %vm574_vm11, %v565_v29, %v573_v17  ;;  %v582_v41 = vsel %vm574_vm11, %v573_v17, %v565_v29  ;;  %v613_v29 = vpack.c.bf16 %v1910_v42, %v1882_v34 }
 0x228   : > { %v602_v30 = vmul.f32 %v2069_v28, %v582_v41  ;;  %v603_v61 = vmul.f32 %v2076_v35, %v578_v39  ;;  %v808_v28 = vld [vmem:[#allocation8 + $0x10] ss:$8 sm:$0x3]  ;;  %v612_v35 = vpack.c.bf16 %v1888_v36, %v1880_v32  ;;  %v614_v36 = vpack.c.bf16 %v1938_v46, %v1936_v45 }
 0x229   : > { %v2280_v52 = vpop.permute.xlu0 %728  ;;  %930 = vmatpush1.bf16.msra.mxu1 %v2561_v11  ;;  %v2293_v26 = vrot.slane %v808_v28, %v2023_v6  ;;  %v2296_v34 = vrot.slane %v808_v28, %v2025_v7  ;;  %v746_v41 = vsel %vm744_vm0, %v2241_v24, %v2261_v43 }
 0x22a   : > { %v785_v13 = vpop.permute.xlu1 %784  ;;  %v607_v63 = vpack.c.bf16 %v603_v61, %v601_v33  ;;  %v606_v51 = vpack.c.bf16 %v602_v30, %v600_v2 }
 0x22c   : > { %931 = vmatprep.subr.bf16.mxu1 %v607_v63 }
 0x22d   : > { %v737_v22 = vpop.permute.xlu0 %736  ;;  %932 = vmatpush1.bf16.msra.mxu1 %v606_v51 }
 0x22e   : > { %933 = vmatprep.subr.bf16.mxu1 %v613_v29  ;;  %v793_v25 = vpop.permute.xlu1 %792  ;;  %v749_v38 = vsel %vm744_vm0, %v737_v22, %v2280_v52  ;;  %v745_v2 = vsel %vm744_vm0, %v2280_v52, %v737_v22  ;;  %v2566_v52 = vld [vmem:[#allocation14_spill] sm:$0xff] }
 0x22f   : > { %v800_v4 = vsel %vm798_vm15, %v785_v13, %v793_v25  ;;  %v804_v32 = vsel %vm798_vm15, %v793_v25, %v785_v13 }
 0x230   : > { %v822_v19 = vmul.f32 %v2293_v26, %v800_v4  ;;  %v823_v9 = vmul.f32 %v2296_v34, %v804_v32 }
 0x231   : > { %v783_v12 = vpop.permute.xlu0 %782  ;;  %934 = vmatpush1.bf16.msra.mxu1 %v612_v35 }
 0x232   : > { %v2298_v42 = vpop.permute.xlu1 %734  ;;  %935 = vmatprep.subr.bf16.mxu1 %v615_v60 }
 0x235   : > { %v791_v5 = vpop.permute.xlu0 %790  ;;  %936 = vmatpush1.bf16.msra.mxu1 %v614_v36 }
 0x236   : > { %v799_v10 = vsel %vm798_vm15, %v783_v12, %v791_v5  ;;  %v803_v45 = vsel %vm798_vm15, %v791_v5, %v783_v12  ;;  %v635_v46 = vpop.permute.xlu1 %634  ;;  %937 = vmatprep.subr.bf16.mxu1 %v2562_v21 }
 0x237   : > { %v820_v23 = vmul.f32 %v2293_v26, %v799_v10  ;;  %v821_v18 = vmul.f32 %v2296_v34, %v803_v45  ;;  %v640_v27 = vsel %vm636_vm12, %v2209_v1, %v635_v46  ;;  %v644_v0 = vsel %vm636_vm12, %v635_v46, %v2209_v1  ;;  %v754_v1 = vld [vmem:[#allocation8 + $0x7] ss:$8 sm:$0x3] }
 0x238   : > { %v664_v62 = vmul.f32 %v2101_v48, %v640_v27  ;;  %v665_v44 = vmul.f32 %v2112_v58, %v644_v0  ;;  %v693_v48 = vsel %vm690_vm14, %v2219_v31, %v2267_v20  ;;  %v697_v58 = vsel %vm690_vm14, %v2267_v20, %v2219_v31 }
 0x239   : > { %v828_v53 = vpack.c.bf16 %v822_v19, %v820_v23  ;;  %v733_v40 = vpop.permute.xlu0 %732  ;;  %938 = vmatpush1.bf16.msra.mxu1 %v2563_v54  ;;  %v829_v56 = vpack.c.bf16 %v823_v9, %v821_v18  ;;  %v759_v17 = vrot.slane %v754_v1, %v2023_v6  ;;  %v763_v39 = vrot.slane %v754_v1, %v2025_v7  ;;  %v2565_v7 = vld [vmem:[#allocation13_spill] sm:$0xff]  ;;  %v1439_v54 = vld [vmem:[%s2527_s2 + $0x18] ss:$12 sps:$4 sm:$0xff]  }
 0x23a   : > { %v789_v59 = vpop.permute.xlu1 %788  ;;  %v669_v15 = vpack.c.bf16 %v665_v44, %v663_v55  ;;  %v668_v16 = vpack.c.bf16 %v664_v62, %v662_v14  ;;  %v2564_v20 = vpack.c.bf16 %v2201_v57, %v2195_v8  ;;  %v750_v6 = vsel %vm744_vm0, %v2261_v43, %v2241_v24  ;;  %v2567_v24 = vld [vmem:[#allocation16_spill] sm:$0xff]  ;;  %v2568_v43 = vld [vmem:[#allocation15_spill] sm:$0xff] }
 0x23b   : > { %970 = vmatprep.subr.bf16.mxu0 %v829_v56  ;;  %v716_v33 = vmul.f32 %v2565_v7, %v693_v48  ;;  %v717_v11 = vmul.f32 %v2566_v52, %v697_v58  ;;  %v767_v13 = vmul.f32 %v763_v39, %v749_v38  ;;  %v766_v63 = vmul.f32 %v759_v17, %v745_v2  ;;  %v1440_v56 = vld [vmem:[%s2527_s2 + $0x20] ss:$12 sps:$4 sm:$0xff]  }
 0x23c   : > { %939 = vmatprep.subr.bf16.mxu1 %v669_v15  ;;  %971 = vmatpush1.bf16.msra.mxu0 %v828_v53  ;;  %v2569_v29 = vpack.c.bf16 %v2567_v24, %v2568_v43  ;;  %v769_v22 = vmul.f32 %v763_v39, %v750_v6  ;;  %v768_v60 = vmul.f32 %v759_v17, %v746_v41 }
 0x23d   : > { %v741_v47 = vpop.permute.xlu0 %740  ;;  %940 = vmatpush1.bf16.msra.mxu1 %v668_v16 }
 0x23e   : > { %v689_v31 = vpop.permute.xlu1 %688  ;;  %941 = vmatprep.subr.bf16.mxu1 %v2564_v20  ;;  %v775_v36 = vpack.c.bf16 %v769_v22, %v767_v13  ;;  %v747_v49 = vsel %vm744_vm0, %v733_v40, %v741_v47  ;;  %v774_v5 = vpack.c.bf16 %v768_v60, %v766_v63 }
 0x23f   : > { %v694_v30 = vsel %vm690_vm14, %v2221_v37, %v689_v31  ;;  %v698_v61 = vsel %vm690_vm14, %v689_v31, %v2221_v37  ;;  %v751_v37 = vsel %vm744_vm0, %v741_v47, %v733_v40  ;;  %v770_v55 = vmul.f32 %v759_v17, %v747_v49  ;;  %v1433_v40 = vld [vmem:[%s2527_s2] ss:$12 sps:$4 sm:$0xff]  }
 0x240   : > { %v718_v8 = vmul.f32 %v2565_v7, %v694_v30  ;;  %v719_v57 = vmul.f32 %v2566_v52, %v698_v61  ;;  %v771_v19 = vmul.f32 %v763_v39, %v751_v37 }
 0x241   : > { %v787_v51 = vpop.permute.xlu0 %786  ;;  %942 = vmatpush1.bf16.msra.mxu1 %v2569_v29 }
 0x242   : > { %v743_v25 = vpop.permute.xlu1 %742  ;;  %v723_v28 = vpack.c.bf16 %v719_v57, %v717_v11  ;;  %v722_v35 = vpack.c.bf16 %v718_v8, %v716_v33 }
 0x243   : > { %v748_v12 = vsel %vm744_vm0, %v2298_v42, %v743_v25  ;;  %v752_v4 = vsel %vm744_vm0, %v743_v25, %v2298_v42 }
 0x244   : > { %v773_v32 = vmul.f32 %v763_v39, %v752_v4  ;;  %943 = vmatprep.subr.bf16.mxu1 %v723_v28  ;;  %v772_v9 = vmul.f32 %v759_v17, %v748_v12 }
 0x245   : > { %v795_v50 = vpop.permute.xlu0 %794  ;;  %944 = vmatpush1.bf16.msra.mxu1 %v722_v35 }
 0x246   : > { %v801_v10 = vsel %vm798_vm15, %v787_v51, %v795_v50  ;;  %v805_v45 = vsel %vm798_vm15, %v795_v50, %v787_v51  ;;  %v797_v46 = vpop.permute.xlu1 %796  ;;  %945 = vmatprep.subr.bf16.mxu1 %v775_v36  ;;  %v777_v14 = vpack.c.bf16 %v773_v32, %v771_v19  ;;  %v776_v53 = vpack.c.bf16 %v772_v9, %v770_v55 }
 0x247   : > { %v824_v42 = vmul.f32 %v2293_v26, %v801_v10  ;;  %v825_v21 = vmul.f32 %v2296_v34, %v805_v45  ;;  %v802_v23 = vsel %vm798_vm15, %v789_v59, %v797_v46  ;;  %v806_v18 = vsel %vm798_vm15, %v797_v46, %v789_v59  ;;  %v1441_v10 = vld [vmem:[%s2528_s3] sm:$0xff]   ;;  %v1442_v45 = vld [vmem:[%s2528_s3 + $0x8] sm:$0xff]   ;;  %v1443_v46 = vld [vmem:[%s2528_s3 + $0x10] sm:$0xff]  }
 0x248   : > { %v826_v27 = vmul.f32 %v2293_v26, %v802_v23  ;;  %v827_v0 = vmul.f32 %v2296_v34, %v806_v18  ;;  %v1437_v26 = vld [vmem:[%s2527_s2 + $0x1c] ss:$12 sps:$4 sm:$0xff]   ;;  %v2570_v34 = vmov 0   ;;  %v1445_v23 = vld [vmem:[%s1851_s14] sm:$0xff] }
 0x249   : > { %946 = vmatpush1.bf16.msra.mxu1 %v774_v5 }
 0x24a   : > { %v830_v62 = vpack.c.bf16 %v826_v27, %v824_v42  ;;  %947 = vmatprep.subr.bf16.mxu1 %v777_v14  ;;  %v831_v44 = vpack.c.bf16 %v827_v0, %v825_v21  ;;  %v1444_v42 = vld [vmem:[%s2528_s3 + $0x18] sm:$0xff]   ;;  %v1446_v0 = vld [vmem:[%s1851_s14 + $0x8] sm:$0xff] }
 0x24c   : > { %972 = vmatprep.subr.bf16.mxu0 %v831_v44 }
 0x24d   : > { %948 = vmatpush1.bf16.msra.mxu1 %v776_v53  ;;  %973 = vmatpush1.bf16.msra.mxu0 %v830_v62  ;;  %v1447_v62 = vld [vmem:[%s1851_s14 + $0x10] sm:$0xff] }
 0x250   : > { %950 = vmatmul.mubr.bf16.vlgmr.msra.gmra.mrb[0].mxu1 %v1433_v40  ;;  %1325 = vmatmul.mubr.msk.bf16.vlgmr.msra.gmra.mrb[8].mxu0 %vm910_vm1, %v1436_v3  ;;  %v1448_v40 = vld [vmem:[%s1851_s14 + $0x18] sm:$0xff] }
 0x251   : > { %959 = vmatprep.mubr.bf16.mxu1 %v1437_v26  ;;  %1012 = vmatprep.mubr.bf16.mxu0 %v2570_v34 }
 0x258   : > { %960 = vmatmul.mubr.bf16.gmra.mrb[4].mxu1 %v1439_v54  ;;  %1326 = vmatmul.mubr.msk.bf16.gmra.mrb[12].mxu0 %vm910_vm1, %v1440_v56 }
 0x259   : > { %1123 = vmatprep.mubr.bf16.mxu0 %v2570_v34 }
 0x323   : > { %v951_v59 = vpop.f32.mrb[0].mxu1  ;;  %v1004_v15 = vpop.f32.mrb[8].mxu0 }
 0x324   : > { %v1005_v16 = vadd.f32 %v1004_v15, %v951_v59  ;;  %v953_v1 = vpop.f32.mrb[1].mxu1  ;;  %v1006_v48 = vpop.f32.mrb[9].mxu0  ;;  %v1450_v59 = vld [vmem:[%s1851_s14 + $0x28] sm:$0xff] }
 0x325   : > { %v1007_v58 = vadd.f32 %v1006_v48, %v953_v1  ;;  %v955_v38 = vpop.f32.mrb[2].mxu1  ;;  %v1008_v47 = vpop.f32.mrb[10].mxu0  ;;  %v1451_v1 = vld [vmem:[%s1851_s14 + $0x30] sm:$0xff] }
 0x326   : > { %v1031_v17 = vmul.f32 0.2, %v1005_v16  ;;  %v1009_v39 = vadd.f32 %v1008_v47, %v955_v38  ;;  %v957_v41 = vpop.f32.mrb[3].mxu1  ;;  %v1010_v2 = vpop.f32.mrb[11].mxu0  ;;  %vm1023_vm2 = vcmp.gt.f32.partialorder %v1005_v16, 0.0  ;;  %v1452_v38 = vld [vmem:[%s1851_s14 + $0x38] sm:$0xff] }
 0x327   : > { %v1032_v31 = vmul.f32 0.2, %v1007_v58  ;;  %v1011_v20 = vadd.f32 %v1010_v2, %v957_v41  ;;  %vm1024_vm3 = vcmp.gt.f32.partialorder %v1007_v58, 0.0 }
 0x328   : > { %vm1025_vm4 = vcmp.gt.f32.partialorder %v1009_v39, 0.0  ;;  %v1033_v6 = vmul.f32 0.2, %v1009_v39  ;;  %v1039_v33 = vsel %vm1023_vm2, %v1005_v16, %v1031_v17 }
 0x329   : > { %vm1026_vm5 = vcmp.gt.f32.partialorder %v1011_v20, 0.0  ;;  %v1034_v7 = vmul.f32 0.2, %v1011_v20  ;;  %v1040_v13 = vsel %vm1024_vm3, %v1007_v58, %v1032_v31  ;;  %v1454_v31 = vld [vmem:[%s1851_s14 + $0x48] sm:$0xff] }
 0x32a   : > { %v1041_v30 = vsel %vm1025_vm4, %v1009_v39, %v1033_v6  ;;  %v1453_v39 = vld [vmem:[%s1851_s14 + $0x40] sm:$0xff] }
 0x32b   : > { %v1055_v61 = vpack.c.bf16 %v1041_v30, %v1039_v33  ;;  %v961_v52 = vpop.f32.mrb[4].mxu1  ;;  %v1014_v11 = vpop.f32.mrb[12].mxu0  ;;  %v1042_v8 = vsel %vm1026_vm5, %v1011_v20, %v1034_v7  ;;  %v1455_v7 = vld [vmem:[%s1851_s14 + $0x50] sm:$0xff] }
 0x32c   : > { %v1015_v57 = vadd.f32 %v1014_v11, %v961_v52  ;;  %v963_v63 = vpop.f32.mrb[5].mxu1  ;;  %v1016_v51 = vpop.f32.mrb[13].mxu0  ;;  %v1056_v24 = vpack.c.bf16 %v1042_v8, %v1040_v13  ;;  %v1457_v13 = vld [vmem:[%s1851_s14 + $0x60] sm:$0xff] }
 0x32d   : > { %v1017_v43 = vadd.f32 %v1016_v51, %v963_v63  ;;  %v965_v29 = vpop.f32.mrb[6].mxu1  ;;  %v1018_v22 = vpop.f32.mrb[14].mxu0  ;;  %v1458_v63 = vld [vmem:[%s1851_s14 + $0x68] sm:$0xff] }
 0x32e   : > { %v1035_v25 = vmul.f32 0.2, %v1015_v57  ;;  %v1019_v28 = vadd.f32 %v1018_v22, %v965_v29  ;;  %v967_v35 = vpop.f32.mrb[7].mxu1  ;;  %v1020_v60 = vpop.f32.mrb[15].mxu0  ;;  %1091 = vmatprep.subr.bf16.mxu0 %v1056_v24  ;;  %vm1027_vm6 = vcmp.gt.f32.partialorder %v1015_v57, 0.0 }
 0x32f   : > { %v1036_v37 = vmul.f32 0.2, %v1017_v43  ;;  %v1021_v12 = vadd.f32 %v1020_v60, %v967_v35  ;;  %1092 = vmatpush1.bf16.msra.mxu0 %v1055_v61  ;;  %vm1028_vm7 = vcmp.gt.f32.partialorder %v1017_v43, 0.0  ;;  %v1456_v61 = vld [vmem:[%s1851_s14 + $0x58] sm:$0xff] }
 0x330   : > { %vm1029_vm8 = vcmp.gt.f32.partialorder %v1019_v28, 0.0  ;;  %v1037_v4 = vmul.f32 0.2, %v1019_v28  ;;  %v1043_v36 = vsel %vm1027_vm6, %v1015_v57, %v1035_v25  ;;  %v1460_v25 = vld [vmem:[%s1851_s14 + $0x78] sm:$0xff] }
 0x331   : > { %vm1030_vm9 = vcmp.gt.f32.partialorder %v1021_v12, 0.0  ;;  %v1038_v32 = vmul.f32 0.2, %v1021_v12  ;;  %v1044_v5 = vsel %vm1028_vm7, %v1017_v43, %v1036_v37  ;;  %v1459_v43 = vld [vmem:[%s1851_s14 + $0x70] sm:$0xff] }
 0x332   : > { %v1045_v49 = vsel %vm1029_vm8, %v1019_v28, %v1037_v4 }
 0x333   : > { %v1057_v50 = vpack.c.bf16 %v1045_v49, %v1043_v36  ;;  %v1046_v19 = vsel %vm1030_vm9, %v1021_v12, %v1038_v32 }
 0x334   : > { %v1058_v9 = vpack.c.bf16 %v1046_v19, %v1044_v5 }
 0x336   : > { %1093 = vmatprep.subr.bf16.mxu0 %v1058_v9 }
 0x337   : > { %1094 = vmatpush1.bf16.msra.mxu0 %v1057_v50 }
 0x33a   : > { %1331 = vmatmul.mubr.msk.bf16.vlgmr.msra.gmra.mrb[16].mxu0 %vm910_vm1, %v1441_v10 }
 0x33b   : > { %1133 = vmatprep.mubr.bf16.mxu0 %v2570_v34 }
 0x342   : > { %1332 = vmatmul.mubr.msk.bf16.gmra.mrb[20].mxu0 %vm910_vm1, %v1442_v45 }
 0x343   : > { %1143 = vmatprep.mubr.bf16.mxu0 %v2570_v34 }
 0x34a   : > { %1333 = vmatmul.mubr.msk.bf16.gmra.mrb[24].mxu0 %vm910_vm1, %v1443_v46 }
 0x34b   : > { %1153 = vmatprep.mubr.bf16.mxu0 %v2570_v34  ;;  %v1449_v34 = vld [vmem:[%s1851_s14 + $0x20] sm:$0xff] }
 0x352   : > { %1334 = vmatmul.mubr.msk.bf16.gmra.mrb[28].mxu0 %vm910_vm1, %v1444_v42 }
 0x40d   : > { %v1125_v21 = vpop.f32.mrb[16].mxu0 }
 0x40e   : > { %v1164_v18 = vadd.f32 %v1445_v23, %v1125_v21  ;;  %v1127_v27 = vpop.f32.mrb[17].mxu0 }
 0x40f   : > { %v1165_v14 = vadd.f32 %v1446_v0, %v1127_v27  ;;  %v1129_v55 = vpop.f32.mrb[18].mxu0 }
 0x410   : > { %1180 = vst [vmem:[%s2441_s10] sm:$0xff] %v1164_v18  ;;  %v1166_v44 = vadd.f32 %v1447_v62, %v1129_v55  ;;  %v1131_v53 = vpop.f32.mrb[19].mxu0 }
 0x411   : > { %1181 = vst [vmem:[%s2441_s10 + $0x8] sm:$0xff] %v1165_v14  ;;  %v1167_v3 = vadd.f32 %v1448_v40, %v1131_v53 }
 0x412   : > { %1182 = vst [vmem:[%s2441_s10 + $0x10] sm:$0xff] %v1166_v44 }
 0x413   : > { %1183 = vst [vmem:[%s2441_s10 + $0x18] sm:$0xff] %v1167_v3 }
 0x415   : > { %v1135_v26 = vpop.f32.mrb[20].mxu0 }
 0x416   : > { %v1168_v54 = vadd.f32 %v1449_v34, %v1135_v26  ;;  %v1137_v56 = vpop.f32.mrb[21].mxu0 }
 0x417   : > { %v1169_v15 = vadd.f32 %v1450_v59, %v1137_v56  ;;  %v1139_v16 = vpop.f32.mrb[22].mxu0 }
 0x418   : > { %1184 = vst [vmem:[%s2441_s10 + $0x20] sm:$0xff] %v1168_v54  ;;  %v1170_v48 = vadd.f32 %v1451_v1, %v1139_v16  ;;  %v1141_v58 = vpop.f32.mrb[23].mxu0 }
 0x419   : > { %1185 = vst [vmem:[%s2441_s10 + $0x28] sm:$0xff] %v1169_v15  ;;  %v1171_v47 = vadd.f32 %v1452_v38, %v1141_v58 }
 0x41a   : > { %1186 = vst [vmem:[%s2441_s10 + $0x30] sm:$0xff] %v1170_v48 }
 0x41b   : > { %1187 = vst [vmem:[%s2441_s10 + $0x38] sm:$0xff] %v1171_v47 }
 0x41d   : > { %v1145_v17 = vpop.f32.mrb[24].mxu0 }
 0x41e   : > { %v1172_v41 = vadd.f32 %v1453_v39, %v1145_v17  ;;  %v1147_v2 = vpop.f32.mrb[25].mxu0 }
 0x41f   : > { %v1173_v20 = vadd.f32 %v1454_v31, %v1147_v2  ;;  %v1149_v6 = vpop.f32.mrb[26].mxu0 }
 0x420   : > { %1188 = vst [vmem:[%s2441_s10 + $0x40] sm:$0xff] %v1172_v41  ;;  %v1174_v33 = vadd.f32 %v1455_v7, %v1149_v6  ;;  %v1151_v30 = vpop.f32.mrb[27].mxu0 }
 0x421   : > { %1189 = vst [vmem:[%s2441_s10 + $0x48] sm:$0xff] %v1173_v20  ;;  %v1175_v52 = vadd.f32 %v1456_v61, %v1151_v30 }
 0x422   : > { %1190 = vst [vmem:[%s2441_s10 + $0x50] sm:$0xff] %v1174_v33 }
 0x423   : > { %1191 = vst [vmem:[%s2441_s10 + $0x58] sm:$0xff] %v1175_v52 }
 0x425   : > { %v1155_v11 = vpop.f32.mrb[28].mxu0 }
 0x426   : > { %v1176_v8 = vadd.f32 %v1457_v13, %v1155_v11  ;;  %v1157_v57 = vpop.f32.mrb[29].mxu0 }
 0x427   : > { %v1177_v51 = vadd.f32 %v1458_v63, %v1157_v57  ;;  %v1159_v24 = vpop.f32.mrb[30].mxu0 }
 0x428   : > { %1192 = vst [vmem:[%s2441_s10 + $0x60] sm:$0xff] %v1176_v8  ;;  %v1178_v29 = vadd.f32 %v1459_v43, %v1159_v24  ;;  %v1161_v22 = vpop.f32.mrb[31].mxu0 }
 0x429   : > { %1193 = vst [vmem:[%s2441_s10 + $0x68] sm:$0xff] %v1177_v51  ;;  %v1179_v28 = vadd.f32 %v1460_v25, %v1161_v22 }
 0x42a   : > { %1194 = vst [vmem:[%s2441_s10 + $0x70] sm:$0xff] %v1178_v29 }
 0x42b   : > { %1195 = vst [vmem:[%s2441_s10 + $0x78] sm:$0xff] %v1179_v28 }
 0x42c   : > { %1560 = shalt.err (!%p1557_p2)
}
 0x42d   : > { %s1561_s14 = scalar_lea.hbm %s2474_s30, 2048  ;;  %s1565_s13 = scalar_lea.hbm %s2530_s5, 4096 }
 0x42e   : > { %p1562_p13 = scmp.ne.s32.totalorder %s2474_s30, %s1561_s14  ;;  %p1566_p4 = scmp.lt.u32.totalorder %s2474_s30, %s2530_s5 }
 0x42f   : > { %p1567_p7 = scmp.lt.u32.totalorder %s1565_s13, %s1561_s14  ;;  %p1569_p11 = scmp.lt.u32.totalorder %s1561_s14, %s2474_s30 }
 0x430   : > { %p1563_p6 = pnand %p1562_p13, %p2571_p0 }
 0x431   : > { %p1568_p8 = por %p1567_p7, %p1566_p4 }
 0x432   : > { %p1564_p10 = pneg %p1563_p6 }
 0x433   : > { %p1570_p1 = por %p1569_p11, %p1568_p8 }
 0x435   : > { %p1571_p3 = pnand %p1570_p1, %p1564_p10 }
 0x437   : > { %1574 = shalt.err (!%p1571_p3)
}
 0x438   : > { %s1636_s15 = smov 256  }
 0x439   : > { %1360 = dma.vmem_to_hbm [thread:$0]  (%p2571_p0), %s2478_s28, 2048, %s2474_s30, %s1197_s22, %s1636_s15, %s1636_s15, %s1628_s26  }
 0x43a PF: > { %s1225_s9 = sand.u32 1, %s1605_s18   ;;  %p2572_p5 = scmp.ne.s32.totalorder %s2543_s25, 0 }
 0x43b   : > { %p2573_p9 = scmp.ge.s32.totalorder %s1617_s21, 2  ;;  %s1226_s11 = scalar_lea.sflag [#allocation5], %s1225_s9 }
 0x43d   : > { %p1374_p12 = pnand %p2573_p9, %p2572_p5 }
 0x43f   : > { %1600 = dma.done.wait (!%p1374_p12), %s1226_s11, 2048  }
 0x440   : > { %1602 = vsyncadd (!%p1374_p12), %s1226_s11, 4294965248  ;;  %p19_p2 = scmp.ge.s32.totalorder %s1780_s16, 4   ;;  %s2574_s18 = smov %s1609_s19 }
 0x441   : > { %s2575_s19 = smov %s1613_s20  ;;  %s2576_s20 = smov %s1789_s27 }
 0x442   : > { %s2577_s21 = smov %s1780_s16  ;;  %21 = sbr.rel (!%p19_p2) target bundleno = 6 (0x6), region = 100 }
 0x449   :  { %1231 = vsyncpa [#allocation4], 1 }
 0x44a   :  { %1233 = vsyncpa [#allocation4 + $0x1], 1 }
 0x44b   :  { %1234 = vsyncpa [#allocation7], 1 }
 0x44c   :  { %1235 = vsyncpa [#allocation5], 1 }
 0x44d   :  { %1237 = vsyncpa [#allocation5 + $0x1], 1 }

</bundles_post_ra>
